<compile_context>
chip_gen: v7x
topology: tpu7x:2x2x1
jax: 0.10.0
libtpu: 0.0.40
codegen_flags: <defaults>
</compile_context>

<pallas_src>
import math
import functools

import jax
import jax.numpy as jnp
from jax.experimental import pallas as pl
from jax.experimental.pallas import tpu as pltpu


def cross_attention_kernel(x_ref, enc_ref,
                           wq_ref, bq_ref,
                           wk_ref, bk_ref,
                           wv_ref, bv_ref,
                           wp_ref, bp_ref,
                           y_ref, att_ref,
                           y_heads,            # VMEM scratch (B_blk*T, C)
                           *, n_heads):
    b_blk, T, C = x_ref.shape
    _, T_E, CE = enc_ref.shape
    D = C // n_heads
    in_dt = x_ref.dtype

    x2 = x_ref[...].reshape(b_blk * T, C)        # (B_blk*T,   C)
    e2 = enc_ref[...].reshape(b_blk * T_E, CE)   # (B_blk*T_E, CE)

    # Full-width projections: one lane-dense matmul each (f32 accumulation),
    # results cast back to the activation dtype for the attention matmuls.
    q_all = (jnp.dot(x2, wq_ref[...], preferred_element_type=jnp.float32)
             + bq_ref[...]).astype(in_dt)        # scale already folded into Wq/bq
    k_all = (jnp.dot(e2, wk_ref[...], preferred_element_type=jnp.float32)
             + bk_ref[...]).astype(in_dt)
    v_all = (jnp.dot(e2, wv_ref[...], preferred_element_type=jnp.float32)
             + bv_ref[...]).astype(in_dt)

    inv_heads = 1.0 / n_heads
    att_acc = jnp.zeros((b_blk, T, T_E), jnp.float32)

    # Small static unroll over heads: only the per-head score/softmax/value
    # work lives here; all projection matmuls stay full-width outside.
    for h in range(n_heads):
        lo = h * D
        qh = q_all[:, lo:lo + D].reshape(b_blk, T, D)
        kh = k_all[:, lo:lo + D].reshape(b_blk, T_E, D)
        vh = v_all[:, lo:lo + D].reshape(b_blk, T_E, D)

        # Contract last dims of both operands — no transpose materialized.
        s = jnp.einsum('bqd,bkd->bqk', qh, kh,
                       preferred_element_type=jnp.float32)      # (B_blk, T, T_E)
        s = s - jnp.max(s, axis=-1, keepdims=True)
        p = jnp.exp(s)
        denom = jnp.sum(p, axis=-1, keepdims=True)
        p = p * pl.reciprocal(denom, approx=True)               # EUP, not VPU divide

        att_acc = att_acc + p

        yh = jnp.einsum('bqk,bkd->bqd', p.astype(in_dt), vh,
                        preferred_element_type=jnp.float32)     # (B_blk, T, D)
        # Place this head's context into its lane slot of the concat buffer.
        y_heads[:, lo:lo + D] = yh.reshape(b_blk * T, D).astype(y_heads.dtype)

    # Single lane-dense output projection over the concatenated heads.
    y = (jnp.dot(y_heads[...], wp_ref[...], preferred_element_type=jnp.float32)
         + bp_ref[...])
    y_ref[...] = y.reshape(b_blk, T, C).astype(y_ref.dtype)
    att_ref[...] = (att_acc * inv_heads).astype(att_ref.dtype)


def _pick_batch_block(B, T, target_rows=256, max_rows=1024):
    """Largest divisor of B whose flattened row count stays reasonable."""
    best = 1
    for cand in range(1, B + 1):
        if B % cand == 0 and cand * T <= max(max_rows, T):
            best = cand
            if best * T >= target_rows:
                break
    return best


def _const2(b):
    return (0, 0)


def cross_attention(x, encoder_output, params, n_heads, batch_block=None):
    B, T, C = x.shape
    _, T_E, CE = encoder_output.shape
    assert C % n_heads == 0, "n_embd must be divisible by n_heads"
    D = C // n_heads
    wq, bq, wk, bk, wv, bv, wp, bp = params

    # Fold the 1/sqrt(D) attention scale into the query projection (one-time).
    scale = 1.0 / math.sqrt(D)
    wq = wq * scale
    bq = bq * scale

    bq2 = bq.reshape(1, C)
    bk2 = bk.reshape(1, C)
    bv2 = bv.reshape(1, C)
    bp2 = bp.reshape(1, C)

    b_blk = batch_block if batch_block is not None else _pick_batch_block(B, T)
    assert B % b_blk == 0
    grid = (B // b_blk,)

    kernel = functools.partial(cross_attention_kernel, n_heads=n_heads)

    # TODO(synk): for very large T / T_E, add a second grid axis over T (flash-
    # style online softmax over T_E) so the (T, T_E) score tile fits v7x's
    # 64 MiB VMEM.
    y, att = pl.pallas_call(
        kernel,
        out_shape=(
            jax.ShapeDtypeStruct((B, T, C), x.dtype),
            jax.ShapeDtypeStruct((B, T, T_E), jnp.float32),
        ),
        grid_spec=pltpu.PrefetchScalarGridSpec(
            num_scalar_prefetch=0,
            grid=grid,
            in_specs=[
                pl.BlockSpec((b_blk, T, C), lambda b: (b, 0, 0)),      # x
                pl.BlockSpec((b_blk, T_E, CE), lambda b: (b, 0, 0)),   # encoder_output
                pl.BlockSpec((C, C), _const2),                         # Wq
                pl.BlockSpec((1, C), _const2),                         # bq
                pl.BlockSpec((CE, C), _const2),                        # Wk
                pl.BlockSpec((1, C), _const2),                         # bk
                pl.BlockSpec((CE, C), _const2),                        # Wv
                pl.BlockSpec((1, C), _const2),                         # bv
                pl.BlockSpec((C, C), _const2),                         # Wproj
                pl.BlockSpec((1, C), _const2),                         # bproj
            ],
            out_specs=[
                pl.BlockSpec((b_blk, T, C), lambda b: (b, 0, 0)),
                pl.BlockSpec((b_blk, T, T_E), lambda b: (b, 0, 0)),
            ],
            scratch_shapes=[pltpu.VMEM((b_blk * T, C), x.dtype)],
        ),
        compiler_params=pltpu.CompilerParams(
            dimension_semantics=("parallel",)),
    )(x, encoder_output,
      wq, bq2, wk, bk2, wv, bv2, wp, bp2)
    return y, att


def reference(x, encoder_output, params, n_heads):
    """Pure-JAX reference replicating the PyTorch forward."""
    wq, bq, wk, bk, wv, bv, wp, bp = params
    B, T, C = x.shape
    _, T_E, _ = encoder_output.shape
    D = C // n_heads
    q = x @ wq + bq
    k = encoder_output @ wk + bk
    v = encoder_output @ wv + bv
    q = q.reshape(B, T, n_heads, D).transpose(0, 2, 1, 3)
    k = k.reshape(B, T_E, n_heads, D).transpose(0, 2, 1, 3)
    v = v.reshape(B, T_E, n_heads, D).transpose(0, 2, 1, 3)
    att = jnp.einsum("bhtd,bhsd->bhts", q, k) / math.sqrt(D)
    att = jax.nn.softmax(att, axis=-1)
    y = jnp.einsum("bhts,bhsd->bhtd", att, v)
    y = y.transpose(0, 2, 1, 3).reshape(B, T, C)
    att_mean = att.mean(axis=1)
    y = y @ wp + bp
    return y, att_mean


if __name__ == "__main__":
    # Small, deterministic problem.
    B, T, T_E = 2, 8, 8
    n_embd, condition_embd, n_heads = 32, 24, 4

    key = jax.random.PRNGKey(0)
    ks = jax.random.split(key, 10)

    # Deterministic synthetic parameters, stored as (in_features, out_features).
    wq = jax.random.normal(ks[0], (n_embd, n_embd), jnp.float32) * 0.1
    bq = jax.random.normal(ks[1], (n_embd,), jnp.float32) * 0.1
    wk = jax.random.normal(ks[2], (condition_embd, n_embd), jnp.float32) * 0.1
    bk = jax.random.normal(ks[3], (n_embd,), jnp.float32) * 0.1
    wv = jax.random.normal(ks[4], (condition_embd, n_embd), jnp.float32) * 0.1
    bv = jax.random.normal(ks[5], (n_embd,), jnp.float32) * 0.1
    wp = jax.random.normal(ks[6], (n_embd, n_embd), jnp.float32) * 0.1
    bp = jax.random.normal(ks[7], (n_embd,), jnp.float32) * 0.1
    params = (wq, bq, wk, bk, wv, bv, wp, bp)

    x = jax.random.normal(ks[8], (B, T, n_embd), jnp.float32)
    enc = jax.random.normal(ks[9], (B, T_E, condition_embd), jnp.float32)

    y, att = cross_attention(x, enc, params, n_heads)
    y = jax.block_until_ready(y)
    att = jax.block_until_ready(att)

    y_ref, att_ref = reference(x, enc, params, n_heads)
    # Tolerances allow for the approximate (EUP) reciprocal in the softmax.
    assert jnp.allclose(y, y_ref, atol=2e-3, rtol=2e-3), "y mismatch"
    assert jnp.allclose(att, att_ref, atol=1e-3, rtol=1e-3), "att mismatch"

    print("KERNEL_OK")
</pallas_src>

<mosaic_0001>
module attributes {stable_mosaic.version = 11 : i64} {
  func.func @cross_attention_kernel(%arg0: i32, %arg1: memref<2x8x32xf32, #tpu.memory_space<vmem>>, %arg2: memref<2x8x24xf32, #tpu.memory_space<vmem>>, %arg3: memref<32x32xf32, #tpu.memory_space<vmem>>, %arg4: memref<1x32xf32, #tpu.memory_space<vmem>>, %arg5: memref<24x32xf32, #tpu.memory_space<vmem>>, %arg6: memref<1x32xf32, #tpu.memory_space<vmem>>, %arg7: memref<24x32xf32, #tpu.memory_space<vmem>>, %arg8: memref<1x32xf32, #tpu.memory_space<vmem>>, %arg9: memref<32x32xf32, #tpu.memory_space<vmem>>, %arg10: memref<1x32xf32, #tpu.memory_space<vmem>>, %arg11: memref<2x8x32xf32, #tpu.memory_space<vmem>>, %arg12: memref<2x8x8xf32, #tpu.memory_space<vmem>>, %arg13: memref<16x32xf32, #tpu.memory_space<vmem>>) attributes {dimension_semantics = [#tpu.dimension_semantics<parallel>], iteration_bounds = array<i64: 1>, scalar_prefetch = 0 : i64, scratch_operands = 1 : i64, tpu.core_type = #tpu.core_type<tc>, window_params = [{transform_indices = @transform_0, window_bounds = array<i64: 2, 8, 32>}, {transform_indices = @transform_1, window_bounds = array<i64: 2, 8, 24>}, {pipeline_mode = #tpu.pipeline_mode<synchronous>, transform_indices = @transform_2, window_bounds = array<i64: 32, 32>}, {pipeline_mode = #tpu.pipeline_mode<synchronous>, transform_indices = @transform_3, window_bounds = array<i64: 1, 32>}, {pipeline_mode = #tpu.pipeline_mode<synchronous>, transform_indices = @transform_4, window_bounds = array<i64: 24, 32>}, {pipeline_mode = #tpu.pipeline_mode<synchronous>, transform_indices = @transform_5, window_bounds = array<i64: 1, 32>}, {pipeline_mode = #tpu.pipeline_mode<synchronous>, transform_indices = @transform_6, window_bounds = array<i64: 24, 32>}, {pipeline_mode = #tpu.pipeline_mode<synchronous>, transform_indices = @transform_7, window_bounds = array<i64: 1, 32>}, {pipeline_mode = #tpu.pipeline_mode<synchronous>, transform_indices = @transform_8, window_bounds = array<i64: 32, 32>}, {pipeline_mode = #tpu.pipeline_mode<synchronous>, transform_indices = @transform_9, window_bounds = array<i64: 1, 32>}, {transform_indices = @transform_10, window_bounds = array<i64: 2, 8, 32>}, {transform_indices = @transform_11, window_bounds = array<i64: 2, 8, 8>}]} {
    %c0 = arith.constant 0 : index
    %c0_0 = arith.constant 0 : index
    %c0_1 = arith.constant 0 : index
    %0 = vector.load %arg1[%c0, %c0_0, %c0_1] : memref<2x8x32xf32, #tpu.memory_space<vmem>>, vector<2x8x32xf32>
    %1 = vector.shape_cast %0 : vector<2x8x32xf32> to vector<16x32xf32>
    %c0_2 = arith.constant 0 : index
    %c0_3 = arith.constant 0 : index
    %c0_4 = arith.constant 0 : index
    %2 = vector.load %arg2[%c0_2, %c0_3, %c0_4] : memref<2x8x24xf32, #tpu.memory_space<vmem>>, vector<2x8x24xf32>
    %3 = vector.shape_cast %2 : vector<2x8x24xf32> to vector<16x24xf32>
    %c0_5 = arith.constant 0 : index
    %c0_6 = arith.constant 0 : index
    %4 = vector.load %arg3[%c0_5, %c0_6] : memref<32x32xf32, #tpu.memory_space<vmem>>, vector<32x32xf32>
    %cst = arith.constant dense<0.000000e+00> : vector<16x32xf32>
    %5 = tpu.matmul %1, %4, %cst {dimension_numbers = #tpu.dot_dimension_numbers<[1], [0], [0], [1], [0, 0, 1, 1], [], []>} : vector<16x32xf32>, vector<32x32xf32>, vector<16x32xf32> -> vector<16x32xf32>
    %c0_7 = arith.constant 0 : index
    %c0_8 = arith.constant 0 : index
    %6 = vector.load %arg4[%c0_7, %c0_8] : memref<1x32xf32, #tpu.memory_space<vmem>>, vector<1x32xf32>
    %7 = vector.broadcast %6 : vector<1x32xf32> to vector<16x32xf32>
    %8 = arith.addf %5, %7 : vector<16x32xf32>
    %c0_9 = arith.constant 0 : index
    %c0_10 = arith.constant 0 : index
    %9 = vector.load %arg5[%c0_9, %c0_10] : memref<24x32xf32, #tpu.memory_space<vmem>>, vector<24x32xf32>
    %cst_11 = arith.constant dense<0.000000e+00> : vector<16x32xf32>
    %10 = tpu.matmul %3, %9, %cst_11 {dimension_numbers = #tpu.dot_dimension_numbers<[1], [0], [0], [1], [0, 0, 1, 1], [], []>} : vector<16x24xf32>, vector<24x32xf32>, vector<16x32xf32> -> vector<16x32xf32>
    %c0_12 = arith.constant 0 : index
    %c0_13 = arith.constant 0 : index
    %11 = vector.load %arg6[%c0_12, %c0_13] : memref<1x32xf32, #tpu.memory_space<vmem>>, vector<1x32xf32>
    %12 = vector.broadcast %11 : vector<1x32xf32> to vector<16x32xf32>
    %13 = arith.addf %10, %12 : vector<16x32xf32>
    %c0_14 = arith.constant 0 : index
    %c0_15 = arith.constant 0 : index
    %14 = vector.load %arg7[%c0_14, %c0_15] : memref<24x32xf32, #tpu.memory_space<vmem>>, vector<24x32xf32>
    %cst_16 = arith.constant dense<0.000000e+00> : vector<16x32xf32>
    %15 = tpu.matmul %3, %14, %cst_16 {dimension_numbers = #tpu.dot_dimension_numbers<[1], [0], [0], [1], [0, 0, 1, 1], [], []>} : vector<16x24xf32>, vector<24x32xf32>, vector<16x32xf32> -> vector<16x32xf32>
    %c0_17 = arith.constant 0 : index
    %c0_18 = arith.constant 0 : index
    %16 = vector.load %arg8[%c0_17, %c0_18] : memref<1x32xf32, #tpu.memory_space<vmem>>, vector<1x32xf32>
    %17 = vector.broadcast %16 : vector<1x32xf32> to vector<16x32xf32>
    %18 = arith.addf %15, %17 : vector<16x32xf32>
    %cst_19 = arith.constant 0.000000e+00 : f32
    %19 = vector.broadcast %cst_19 : f32 to vector<2x8x8xf32>
    %20 = vector.extract_strided_slice %8 {offsets = [0, 0], sizes = [16, 8], strides = [1, 1]} : vector<16x32xf32> to vector<16x8xf32>
    %21 = vector.shape_cast %20 : vector<16x8xf32> to vector<2x8x8xf32>
    %22 = vector.extract_strided_slice %13 {offsets = [0, 0], sizes = [16, 8], strides = [1, 1]} : vector<16x32xf32> to vector<16x8xf32>
    %23 = vector.shape_cast %22 : vector<16x8xf32> to vector<2x8x8xf32>
    %24 = vector.extract_strided_slice %18 {offsets = [0, 0], sizes = [16, 8], strides = [1, 1]} : vector<16x32xf32> to vector<16x8xf32>
    %25 = vector.shape_cast %24 : vector<16x8xf32> to vector<2x8x8xf32>
    "tpu.trace_start"() <{level = 10 : i32, message = "bqd,bkd->bqk"}> : () -> ()
    %cst_20 = arith.constant dense<0.000000e+00> : vector<2x8x8xf32>
    %26 = tpu.matmul %21, %23, %cst_20 {dimension_numbers = #tpu.dot_dimension_numbers<[2], [2], [1], [1], [0, 0, 0, 1, 1, 1], [0], [0]>} : vector<2x8x8xf32>, vector<2x8x8xf32>, vector<2x8x8xf32> -> vector<2x8x8xf32>
    "tpu.trace_stop"() : () -> ()
    %cst_21 = arith.constant dense<0xFF800000> : vector<2x8xf32>
    %27 = vector.multi_reduction <maximumf>, %26, %cst_21 [2] : vector<2x8x8xf32> to vector<2x8xf32>
    %28 = vector.shape_cast %27 : vector<2x8xf32> to vector<2x8x1xf32>
    %29 = vector.broadcast %28 : vector<2x8x1xf32> to vector<2x8x8xf32>
    %30 = arith.subf %26, %29 : vector<2x8x8xf32>
    %31 = math.exp %30 : vector<2x8x8xf32>
    %cst_22 = arith.constant dense<0.000000e+00> : vector<2x8xf32>
    %32 = vector.multi_reduction <add>, %31, %cst_22 [2] : vector<2x8x8xf32> to vector<2x8xf32>
    %33 = vector.shape_cast %32 : vector<2x8xf32> to vector<2x8x1xf32>
    %34 = tpu.reciprocal %33 {approx = true} : vector<2x8x1xf32> -> vector<2x8x1xf32>
    %35 = vector.broadcast %34 : vector<2x8x1xf32> to vector<2x8x8xf32>
    %36 = arith.mulf %31, %35 : vector<2x8x8xf32>
    %37 = arith.addf %19, %36 : vector<2x8x8xf32>
    "tpu.trace_start"() <{level = 10 : i32, message = "bqk,bkd->bqd"}> : () -> ()
    %cst_23 = arith.constant dense<0.000000e+00> : vector<2x8x8xf32>
    %38 = tpu.matmul %36, %25, %cst_23 {dimension_numbers = #tpu.dot_dimension_numbers<[2], [1], [1], [2], [0, 0, 0, 1, 1, 2], [0], [0]>} : vector<2x8x8xf32>, vector<2x8x8xf32>, vector<2x8x8xf32> -> vector<2x8x8xf32>
    "tpu.trace_stop"() : () -> ()
    %39 = vector.shape_cast %38 : vector<2x8x8xf32> to vector<16x8xf32>
    %c0_24 = arith.constant 0 : index
    %c0_25 = arith.constant 0 : index
    %40 = vector.load %arg13[%c0_24, %c0_25] : memref<16x32xf32, #tpu.memory_space<vmem>>, vector<16x8xf32>
    tpu.vector_store %arg13[%c0_24, %c0_25], %39 {strides = array<i32>} : memref<16x32xf32, #tpu.memory_space<vmem>>, vector<16x8xf32>,
    %41 = vector.extract_strided_slice %8 {offsets = [0, 8], sizes = [16, 8], strides = [1, 1]} : vector<16x32xf32> to vector<16x8xf32>
    %42 = vector.shape_cast %41 : vector<16x8xf32> to vector<2x8x8xf32>
    %43 = vector.extract_strided_slice %13 {offsets = [0, 8], sizes = [16, 8], strides = [1, 1]} : vector<16x32xf32> to vector<16x8xf32>
    %44 = vector.shape_cast %43 : vector<16x8xf32> to vector<2x8x8xf32>
    %45 = vector.extract_strided_slice %18 {offsets = [0, 8], sizes = [16, 8], strides = [1, 1]} : vector<16x32xf32> to vector<16x8xf32>
    %46 = vector.shape_cast %45 : vector<16x8xf32> to vector<2x8x8xf32>
    "tpu.trace_start"() <{level = 10 : i32, message = "bqd,bkd->bqk"}> : () -> ()
    %cst_26 = arith.constant dense<0.000000e+00> : vector<2x8x8xf32>
    %47 = tpu.matmul %42, %44, %cst_26 {dimension_numbers = #tpu.dot_dimension_numbers<[2], [2], [1], [1], [0, 0, 0, 1, 1, 1], [0], [0]>} : vector<2x8x8xf32>, vector<2x8x8xf32>, vector<2x8x8xf32> -> vector<2x8x8xf32>
    "tpu.trace_stop"() : () -> ()
    %cst_27 = arith.constant dense<0xFF800000> : vector<2x8xf32>
    %48 = vector.multi_reduction <maximumf>, %47, %cst_27 [2] : vector<2x8x8xf32> to vector<2x8xf32>
    %49 = vector.shape_cast %48 : vector<2x8xf32> to vector<2x8x1xf32>
    %50 = vector.broadcast %49 : vector<2x8x1xf32> to vector<2x8x8xf32>
    %51 = arith.subf %47, %50 : vector<2x8x8xf32>
    %52 = math.exp %51 : vector<2x8x8xf32>
    %cst_28 = arith.constant dense<0.000000e+00> : vector<2x8xf32>
    %53 = vector.multi_reduction <add>, %52, %cst_28 [2] : vector<2x8x8xf32> to vector<2x8xf32>
    %54 = vector.shape_cast %53 : vector<2x8xf32> to vector<2x8x1xf32>
    %55 = tpu.reciprocal %54 {approx = true} : vector<2x8x1xf32> -> vector<2x8x1xf32>
    %56 = vector.broadcast %55 : vector<2x8x1xf32> to vector<2x8x8xf32>
    %57 = arith.mulf %52, %56 : vector<2x8x8xf32>
    %58 = arith.addf %37, %57 : vector<2x8x8xf32>
    "tpu.trace_start"() <{level = 10 : i32, message = "bqk,bkd->bqd"}> : () -> ()
    %cst_29 = arith.constant dense<0.000000e+00> : vector<2x8x8xf32>
    %59 = tpu.matmul %57, %46, %cst_29 {dimension_numbers = #tpu.dot_dimension_numbers<[2], [1], [1], [2], [0, 0, 0, 1, 1, 2], [0], [0]>} : vector<2x8x8xf32>, vector<2x8x8xf32>, vector<2x8x8xf32> -> vector<2x8x8xf32>
    "tpu.trace_stop"() : () -> ()
    %60 = vector.shape_cast %59 : vector<2x8x8xf32> to vector<16x8xf32>
    %c0_30 = arith.constant 0 : index
    %c8 = arith.constant 8 : index
    %61 = vector.load %arg13[%c0_30, %c8] : memref<16x32xf32, #tpu.memory_space<vmem>>, vector<16x8xf32>
    tpu.vector_store %arg13[%c0_30, %c8], %60 {strides = array<i32>} : memref<16x32xf32, #tpu.memory_space<vmem>>, vector<16x8xf32>,
    %62 = vector.extract_strided_slice %8 {offsets = [0, 16], sizes = [16, 8], strides = [1, 1]} : vector<16x32xf32> to vector<16x8xf32>
    %63 = vector.shape_cast %62 : vector<16x8xf32> to vector<2x8x8xf32>
    %64 = vector.extract_strided_slice %13 {offsets = [0, 16], sizes = [16, 8], strides = [1, 1]} : vector<16x32xf32> to vector<16x8xf32>
    %65 = vector.shape_cast %64 : vector<16x8xf32> to vector<2x8x8xf32>
    %66 = vector.extract_strided_slice %18 {offsets = [0, 16], sizes = [16, 8], strides = [1, 1]} : vector<16x32xf32> to vector<16x8xf32>
    %67 = vector.shape_cast %66 : vector<16x8xf32> to vector<2x8x8xf32>
    "tpu.trace_start"() <{level = 10 : i32, message = "bqd,bkd->bqk"}> : () -> ()
    %cst_31 = arith.constant dense<0.000000e+00> : vector<2x8x8xf32>
    %68 = tpu.matmul %63, %65, %cst_31 {dimension_numbers = #tpu.dot_dimension_numbers<[2], [2], [1], [1], [0, 0, 0, 1, 1, 1], [0], [0]>} : vector<2x8x8xf32>, vector<2x8x8xf32>, vector<2x8x8xf32> -> vector<2x8x8xf32>
    "tpu.trace_stop"() : () -> ()
    %cst_32 = arith.constant dense<0xFF800000> : vector<2x8xf32>
    %69 = vector.multi_reduction <maximumf>, %68, %cst_32 [2] : vector<2x8x8xf32> to vector<2x8xf32>
    %70 = vector.shape_cast %69 : vector<2x8xf32> to vector<2x8x1xf32>
    %71 = vector.broadcast %70 : vector<2x8x1xf32> to vector<2x8x8xf32>
    %72 = arith.subf %68, %71 : vector<2x8x8xf32>
    %73 = math.exp %72 : vector<2x8x8xf32>
    %cst_33 = arith.constant dense<0.000000e+00> : vector<2x8xf32>
    %74 = vector.multi_reduction <add>, %73, %cst_33 [2] : vector<2x8x8xf32> to vector<2x8xf32>
    %75 = vector.shape_cast %74 : vector<2x8xf32> to vector<2x8x1xf32>
    %76 = tpu.reciprocal %75 {approx = true} : vector<2x8x1xf32> -> vector<2x8x1xf32>
    %77 = vector.broadcast %76 : vector<2x8x1xf32> to vector<2x8x8xf32>
    %78 = arith.mulf %73, %77 : vector<2x8x8xf32>
    %79 = arith.addf %58, %78 : vector<2x8x8xf32>
    "tpu.trace_start"() <{level = 10 : i32, message = "bqk,bkd->bqd"}> : () -> ()
    %cst_34 = arith.constant dense<0.000000e+00> : vector<2x8x8xf32>
    %80 = tpu.matmul %78, %67, %cst_34 {dimension_numbers = #tpu.dot_dimension_numbers<[2], [1], [1], [2], [0, 0, 0, 1, 1, 2], [0], [0]>} : vector<2x8x8xf32>, vector<2x8x8xf32>, vector<2x8x8xf32> -> vector<2x8x8xf32>
    "tpu.trace_stop"() : () -> ()
    %81 = vector.shape_cast %80 : vector<2x8x8xf32> to vector<16x8xf32>
    %c0_35 = arith.constant 0 : index
    %c16 = arith.constant 16 : index
    %82 = vector.load %arg13[%c0_35, %c16] : memref<16x32xf32, #tpu.memory_space<vmem>>, vector<16x8xf32>
    tpu.vector_store %arg13[%c0_35, %c16], %81 {strides = array<i32>} : memref<16x32xf32, #tpu.memory_space<vmem>>, vector<16x8xf32>,
    %83 = vector.extract_strided_slice %8 {offsets = [0, 24], sizes = [16, 8], strides = [1, 1]} : vector<16x32xf32> to vector<16x8xf32>
    %84 = vector.shape_cast %83 : vector<16x8xf32> to vector<2x8x8xf32>
    %85 = vector.extract_strided_slice %13 {offsets = [0, 24], sizes = [16, 8], strides = [1, 1]} : vector<16x32xf32> to vector<16x8xf32>
    %86 = vector.shape_cast %85 : vector<16x8xf32> to vector<2x8x8xf32>
    %87 = vector.extract_strided_slice %18 {offsets = [0, 24], sizes = [16, 8], strides = [1, 1]} : vector<16x32xf32> to vector<16x8xf32>
    %88 = vector.shape_cast %87 : vector<16x8xf32> to vector<2x8x8xf32>
    "tpu.trace_start"() <{level = 10 : i32, message = "bqd,bkd->bqk"}> : () -> ()
    %cst_36 = arith.constant dense<0.000000e+00> : vector<2x8x8xf32>
    %89 = tpu.matmul %84, %86, %cst_36 {dimension_numbers = #tpu.dot_dimension_numbers<[2], [2], [1], [1], [0, 0, 0, 1, 1, 1], [0], [0]>} : vector<2x8x8xf32>, vector<2x8x8xf32>, vector<2x8x8xf32> -> vector<2x8x8xf32>
    "tpu.trace_stop"() : () -> ()
    %cst_37 = arith.constant dense<0xFF800000> : vector<2x8xf32>
    %90 = vector.multi_reduction <maximumf>, %89, %cst_37 [2] : vector<2x8x8xf32> to vector<2x8xf32>
    %91 = vector.shape_cast %90 : vector<2x8xf32> to vector<2x8x1xf32>
    %92 = vector.broadcast %91 : vector<2x8x1xf32> to vector<2x8x8xf32>
    %93 = arith.subf %89, %92 : vector<2x8x8xf32>
    %94 = math.exp %93 : vector<2x8x8xf32>
    %cst_38 = arith.constant dense<0.000000e+00> : vector<2x8xf32>
    %95 = vector.multi_reduction <add>, %94, %cst_38 [2] : vector<2x8x8xf32> to vector<2x8xf32>
    %96 = vector.shape_cast %95 : vector<2x8xf32> to vector<2x8x1xf32>
    %97 = tpu.reciprocal %96 {approx = true} : vector<2x8x1xf32> -> vector<2x8x1xf32>
    %98 = vector.broadcast %97 : vector<2x8x1xf32> to vector<2x8x8xf32>
    %99 = arith.mulf %94, %98 : vector<2x8x8xf32>
    %100 = arith.addf %79, %99 : vector<2x8x8xf32>
    "tpu.trace_start"() <{level = 10 : i32, message = "bqk,bkd->bqd"}> : () -> ()
    %cst_39 = arith.constant dense<0.000000e+00> : vector<2x8x8xf32>
    %101 = tpu.matmul %99, %88, %cst_39 {dimension_numbers = #tpu.dot_dimension_numbers<[2], [1], [1], [2], [0, 0, 0, 1, 1, 2], [0], [0]>} : vector<2x8x8xf32>, vector<2x8x8xf32>, vector<2x8x8xf32> -> vector<2x8x8xf32>
    "tpu.trace_stop"() : () -> ()
    %102 = vector.shape_cast %101 : vector<2x8x8xf32> to vector<16x8xf32>
    %c0_40 = arith.constant 0 : index
    %c24 = arith.constant 24 : index
    %103 = vector.load %arg13[%c0_40, %c24] : memref<16x32xf32, #tpu.memory_space<vmem>>, vector<16x8xf32>
    tpu.vector_store %arg13[%c0_40, %c24], %102 {strides = array<i32>} : memref<16x32xf32, #tpu.memory_space<vmem>>, vector<16x8xf32>,
    %c0_41 = arith.constant 0 : index
    %c0_42 = arith.constant 0 : index
    %104 = vector.load %arg13[%c0_41, %c0_42] : memref<16x32xf32, #tpu.memory_space<vmem>>, vector<16x32xf32>
    %c0_43 = arith.constant 0 : index
    %c0_44 = arith.constant 0 : index
    %105 = vector.load %arg9[%c0_43, %c0_44] : memref<32x32xf32, #tpu.memory_space<vmem>>, vector<32x32xf32>
    %cst_45 = arith.constant dense<0.000000e+00> : vector<16x32xf32>
    %106 = tpu.matmul %104, %105, %cst_45 {dimension_numbers = #tpu.dot_dimension_numbers<[1], [0], [0], [1], [0, 0, 1, 1], [], []>} : vector<16x32xf32>, vector<32x32xf32>, vector<16x32xf32> -> vector<16x32xf32>
    %c0_46 = arith.constant 0 : index
    %c0_47 = arith.constant 0 : index
    %107 = vector.load %arg10[%c0_46, %c0_47] : memref<1x32xf32, #tpu.memory_space<vmem>>, vector<1x32xf32>
    %108 = vector.broadcast %107 : vector<1x32xf32> to vector<16x32xf32>
    %109 = arith.addf %106, %108 : vector<16x32xf32>
    %110 = vector.shape_cast %109 : vector<16x32xf32> to vector<2x8x32xf32>
    %c0_48 = arith.constant 0 : index
    %c0_49 = arith.constant 0 : index
    %c0_50 = arith.constant 0 : index
    %111 = vector.load %arg11[%c0_48, %c0_49, %c0_50] : memref<2x8x32xf32, #tpu.memory_space<vmem>>, vector<2x8x32xf32>
    tpu.vector_store %arg11[%c0_48, %c0_49, %c0_50], %110 {strides = array<i32>} : memref<2x8x32xf32, #tpu.memory_space<vmem>>, vector<2x8x32xf32>,
    %cst_51 = arith.constant 2.500000e-01 : f32
    %112 = vector.broadcast %cst_51 : f32 to vector<2x8x8xf32>
    %113 = arith.mulf %100, %112 : vector<2x8x8xf32>
    %c0_52 = arith.constant 0 : index
    %c0_53 = arith.constant 0 : index
    %c0_54 = arith.constant 0 : index
    %114 = vector.load %arg12[%c0_52, %c0_53, %c0_54] : memref<2x8x8xf32, #tpu.memory_space<vmem>>, vector<2x8x8xf32>
    tpu.vector_store %arg12[%c0_52, %c0_53, %c0_54], %113 {strides = array<i32>} : memref<2x8x8xf32, #tpu.memory_space<vmem>>, vector<2x8x8xf32>,
    return
  }
  func.func @transform_0(%arg0: i32) -> (i32, i32, i32) {
    %c0_i32 = arith.constant 0 : i32
    %c0_i32_0 = arith.constant 0 : i32
    %c0_i32_1 = arith.constant 0 : i32
    return %arg0, %c0_i32, %c0_i32_0 : i32, i32, i32
  }
  func.func @transform_1(%arg0: i32) -> (i32, i32, i32) {
    %c0_i32 = arith.constant 0 : i32
    %c0_i32_0 = arith.constant 0 : i32
    %c0_i32_1 = arith.constant 0 : i32
    return %arg0, %c0_i32, %c0_i32_0 : i32, i32, i32
  }
  func.func @transform_2(%arg0: i32) -> (i32, i32) {
    %c0_i32 = arith.constant 0 : i32
    %c0_i32_0 = arith.constant 0 : i32
    %c0_i32_1 = arith.constant 0 : i32
    return %c0_i32, %c0_i32_0 : i32, i32
  }
  func.func @transform_3(%arg0: i32) -> (i32, i32) {
    %c0_i32 = arith.constant 0 : i32
    %c0_i32_0 = arith.constant 0 : i32
    %c0_i32_1 = arith.constant 0 : i32
    return %c0_i32, %c0_i32_0 : i32, i32
  }
  func.func @transform_4(%arg0: i32) -> (i32, i32) {
    %c0_i32 = arith.constant 0 : i32
    %c0_i32_0 = arith.constant 0 : i32
    %c0_i32_1 = arith.constant 0 : i32
    return %c0_i32, %c0_i32_0 : i32, i32
  }
  func.func @transform_5(%arg0: i32) -> (i32, i32) {
    %c0_i32 = arith.constant 0 : i32
    %c0_i32_0 = arith.constant 0 : i32
    %c0_i32_1 = arith.constant 0 : i32
    return %c0_i32, %c0_i32_0 : i32, i32
  }
  func.func @transform_6(%arg0: i32) -> (i32, i32) {
    %c0_i32 = arith.constant 0 : i32
    %c0_i32_0 = arith.constant 0 : i32
    %c0_i32_1 = arith.constant 0 : i32
    return %c0_i32, %c0_i32_0 : i32, i32
  }
  func.func @transform_7(%arg0: i32) -> (i32, i32) {
    %c0_i32 = arith.constant 0 : i32
    %c0_i32_0 = arith.constant 0 : i32
    %c0_i32_1 = arith.constant 0 : i32
    return %c0_i32, %c0_i32_0 : i32, i32
  }
  func.func @transform_8(%arg0: i32) -> (i32, i32) {
    %c0_i32 = arith.constant 0 : i32
    %c0_i32_0 = arith.constant 0 : i32
    %c0_i32_1 = arith.constant 0 : i32
    return %c0_i32, %c0_i32_0 : i32, i32
  }
  func.func @transform_9(%arg0: i32) -> (i32, i32) {
    %c0_i32 = arith.constant 0 : i32
    %c0_i32_0 = arith.constant 0 : i32
    %c0_i32_1 = arith.constant 0 : i32
    return %c0_i32, %c0_i32_0 : i32, i32
  }
  func.func @transform_10(%arg0: i32) -> (i32, i32, i32) {
    %c0_i32 = arith.constant 0 : i32
    %c0_i32_0 = arith.constant 0 : i32
    %c0_i32_1 = arith.constant 0 : i32
    return %arg0, %c0_i32, %c0_i32_0 : i32, i32, i32
  }
  func.func @transform_11(%arg0: i32) -> (i32, i32, i32) {
    %c0_i32 = arith.constant 0 : i32
    %c0_i32_0 = arith.constant 0 : i32
    %c0_i32_1 = arith.constant 0 : i32
    return %arg0, %c0_i32, %c0_i32_0 : i32, i32, i32
  }
}

</mosaic_0001>

<bundles_post_ra>
// kernel: tpu_custom_call.1
= control target key start
LH: loop header
LB: loop body
LE: loop exit
PB: predicated region body
PF: predicated region fallthrough
CT: control target
= control target key end

     0   :  { %17 = vsyncpa [#allocation4], 0  ;;  %s2776_s0 = inlined_call_operand.hbm [shape: f32[2,8,32], index: 0, kind: input, shape index: {}]   ;;  %s2777_s1 = inlined_call_operand.hbm [shape: f32[2,8,24], index: 1, kind: input, shape index: {}]   ;;  %s2778_s2 = inlined_call_operand.hbm [shape: f32[32,32], index: 2, kind: input, shape index: {}]   ;;  %s2779_s3 = inlined_call_operand.vmem [shape: f32[1,32], index: 3, kind: input, shape index: {}]   ;;  %s2780_s4 = inlined_call_operand.hbm [shape: f32[24,32], index: 4, kind: input, shape index: {}]   ;;  %s2781_s5 = inlined_call_operand.vmem [shape: f32[1,32], index: 5, kind: input, shape index: {}]   ;;  %s2782_s6 = inlined_call_operand.hbm [shape: f32[24,32], index: 6, kind: input, shape index: {}]   ;;  %s2783_s7 = inlined_call_operand.vmem [shape: f32[1,32], index: 7, kind: input, shape index: {}]   ;;  %s2784_s8 = inlined_call_operand.hbm [shape: f32[32,32], index: 8, kind: input, shape index: {}]   ;;  %s2785_s9 = inlined_call_operand.vmem [shape: f32[1,32], index: 9, kind: input, shape index: {}]   ;;  %s2786_s10 = inlined_call_operand.hbm [shape: f32[2,8,32], index: 10, kind: output, shape index: {0}]   ;;  %s2787_s11 = inlined_call_operand.hbm [shape: f32[2,8,8], index: 11, kind: output, shape index: {1}]  }
   0x1   :  { %18 = vsyncpa [#allocation7], 0 }
   0x2   :  { %19 = vsyncpa [#allocation10], 0 }
   0x3   :  { %20 = vsyncpa [#allocation13], 0 }
   0x4   :  { %21 = vsyncpa [#allocation5], 0 }
   0x5   :  { %22 = vsyncpa [#allocation16], 0  ;;  %s2358_s17 = smov [#allocation6]   ;;  %s2359_s19 = smov [#allocation9]  }
   0x6   :  { %s40_s18 = sshll.u32 %s2358_s17, 4  ;;  %s66_s20 = sshll.u32 %s2359_s19, 4  ;;  %s41_s18 = int_to_ptr.vmem [resolvable:$true] %s40_s18  ;;  %s2435_s20 = int_to_ptr.vmem [resolvable:$true] %s66_s20 }
   0x7   :  { %s2170_s23 = scalar_lea.hbm %s2777_s1, 256 }
   0x8   :  { %p2171_p0 = scmp.ne.s32.totalorder %s2777_s1, %s2170_s23  ;;  %p2174_p1 = scmp.lt.u32.totalorder %s2170_s23, %s2777_s1 }
   0xa   :  { %p2176_p2 = pnand %p2174_p1, %p2171_p0 }
   0xc   :  { %2179 = shalt.err (!%p2176_p2)
}
   0xd   :  { %s2180_s28 = scalar_lea.vmem %s41_s18, 256  ;;  %p2185_p4 = scmp.lt.s32.totalorder %s41_s18, %s41_s18 }
   0xe   :  { %p2181_p3 = scmp.ne.s32.totalorder %s41_s18, %s2180_s28  ;;  %p2186_p5 = scmp.lt.s32.totalorder %s2180_s28, %s2180_s28 }
  0x10   :  { %p2187_p6 = por %p2186_p5, %p2185_p4 }
  0x12   :  { %p2188_p7 = pnand %p2187_p6, %p2181_p3 }
  0x14   :  { %2191 = shalt.err (!%p2188_p7)
}
  0x15   :  { %s2360_s29 = smov 128   ;;  %s2361_s30 = smov 8  }
  0x16   :  { %46 = dma.hbm_to_vmem [thread:$0]  %s2777_s1, 256, %s41_s18, [#allocation7], %s2360_s29, %s2360_s29, %s2361_s30  }
  0x17   :  { %s2192_s16 = scalar_lea.hbm %s2780_s4, 384 }
  0x18   :  { %p2193_p8 = scmp.ne.s32.totalorder %s2780_s4, %s2192_s16  ;;  %p2196_p9 = scmp.lt.u32.totalorder %s2192_s16, %s2780_s4 }
  0x1a   :  { %p2198_p10 = pnand %p2196_p9, %p2193_p8 }
  0x1c   :  { %2201 = shalt.err (!%p2198_p10)
}
  0x1d   :  { %s2202_s23 = scalar_lea.vmem %s2435_s20, 384  ;;  %p2207_p12 = scmp.lt.s32.totalorder %s2435_s20, %s2435_s20 }
  0x1e   :  { %p2203_p11 = scmp.ne.s32.totalorder %s2435_s20, %s2202_s23  ;;  %p2208_p13 = scmp.lt.s32.totalorder %s2202_s23, %s2202_s23 }
  0x20   :  { %p2209_p0 = por %p2208_p13, %p2207_p12 }
  0x22   :  { %p2210_p1 = pnand %p2209_p0, %p2203_p11 }
  0x24   :  { %2213 = shalt.err (!%p2210_p1)
}
  0x25   :  { %72 = dma.hbm_to_vmem [thread:$0]  %s2780_s4, 384, %s2435_s20, [#allocation10], %s2360_s29, %s2360_s29, %s2361_s30  }
  0x26   :  { %s2362_s24 = smov [#allocation3]   ;;  %s2363_s26 = smov [#allocation8]  }
  0x27   :  { %s28_s25 = sshll.u32 %s2362_s24, 4  ;;  %s52_s27 = sshll.u32 %s2363_s26, 4  ;;  %s29_s25 = int_to_ptr.vmem [resolvable:$true] %s28_s25  ;;  %s2472_s27 = int_to_ptr.vmem [resolvable:$true] %s52_s27 }
  0x28   :  { %s2214_s13 = scalar_lea.hbm %s2776_s0, 256 }
  0x29   :  { %p2215_p2 = scmp.ne.s32.totalorder %s2776_s0, %s2214_s13  ;;  %p2218_p3 = scmp.lt.u32.totalorder %s2214_s13, %s2776_s0 }
  0x2b   :  { %p2220_p4 = pnand %p2218_p3, %p2215_p2 }
  0x2d   :  { %2223 = shalt.err (!%p2220_p4)
}
  0x2e   :  { %s2224_s4 = scalar_lea.vmem %s29_s25, 256  ;;  %p2229_p6 = scmp.lt.s32.totalorder %s29_s25, %s29_s25 }
  0x2f   :  { %p2225_p5 = scmp.ne.s32.totalorder %s29_s25, %s2224_s4  ;;  %p2230_p7 = scmp.lt.s32.totalorder %s2224_s4, %s2224_s4 }
  0x31   :  { %p2231_p8 = por %p2230_p7, %p2229_p6 }
  0x33   :  { %p2232_p9 = pnand %p2231_p8, %p2225_p5 }
  0x35   :  { %2235 = shalt.err (!%p2232_p9)
}
  0x36   :  { %34 = dma.hbm_to_vmem [thread:$0]  %s2776_s0, 256, %s29_s25, [#allocation4], %s2360_s29, %s2360_s29, %s2361_s30  }
  0x37   :  { %s2236_s23 = scalar_lea.hbm %s2778_s2, 512 }
  0x38   :  { %p2237_p10 = scmp.ne.s32.totalorder %s2778_s2, %s2236_s23  ;;  %p2240_p11 = scmp.lt.u32.totalorder %s2236_s23, %s2778_s2 }
  0x3a   :  { %p2242_p12 = pnand %p2240_p11, %p2237_p10 }
  0x3c   :  { %2245 = shalt.err (!%p2242_p12)
}
  0x3d   :  { %s2246_s28 = scalar_lea.vmem %s2472_s27, 512  ;;  %p2251_p0 = scmp.lt.s32.totalorder %s2472_s27, %s2472_s27 }
  0x3e   :  { %p2247_p13 = scmp.ne.s32.totalorder %s2472_s27, %s2246_s28  ;;  %p2252_p1 = scmp.lt.s32.totalorder %s2246_s28, %s2246_s28 }
  0x40   :  { %p2253_p2 = por %p2252_p1, %p2251_p0 }
  0x42   :  { %p2254_p3 = pnand %p2253_p2, %p2247_p13 }
  0x44   :  { %2257 = shalt.err (!%p2254_p3)
}
  0x45   :  { %58 = dma.hbm_to_vmem [thread:$0]  %s2778_s2, 512, %s2472_s27, [#allocation7], %s2360_s29, %s2360_s29, %s2361_s30  }
  0x46   :  { %s2364_s12 = smov [#allocation11]   ;;  %s2365_s14 = smov [#allocation12]  }
  0x47   :  { %s80_s13 = sshll.u32 %s2364_s12, 4  ;;  %s94_s15 = sshll.u32 %s2365_s14, 4  ;;  %s81_s13 = int_to_ptr.vmem [resolvable:$true] %s80_s13  ;;  %s2509_s15 = int_to_ptr.vmem [resolvable:$true] %s94_s15 }
  0x48   :  { %s2258_s4 = scalar_lea.hbm %s2782_s6, 384 }
  0x49   :  { %p2259_p4 = scmp.ne.s32.totalorder %s2782_s6, %s2258_s4  ;;  %p2262_p5 = scmp.lt.u32.totalorder %s2258_s4, %s2782_s6 }
  0x4b   :  { %p2264_p6 = pnand %p2262_p5, %p2259_p4 }
  0x4d   :  { %2267 = shalt.err (!%p2264_p6)
}
  0x4e   :  { %s2268_s2 = scalar_lea.vmem %s81_s13, 384  ;;  %p2273_p8 = scmp.lt.s32.totalorder %s81_s13, %s81_s13 }
  0x4f   :  { %p2269_p7 = scmp.ne.s32.totalorder %s81_s13, %s2268_s2  ;;  %p2274_p9 = scmp.lt.s32.totalorder %s2268_s2, %s2268_s2 }
  0x51   :  { %p2275_p10 = por %p2274_p9, %p2273_p8 }
  0x53   :  { %p2276_p11 = pnand %p2275_p10, %p2269_p7 }
  0x55   :  { %2279 = shalt.err (!%p2276_p11)
}
  0x56   :  { %86 = dma.hbm_to_vmem [thread:$0]  %s2782_s6, 384, %s81_s13, [#allocation10], %s2360_s29, %s2360_s29, %s2361_s30  }
  0x57   :  { %s2280_s24 = scalar_lea.hbm %s2784_s8, 512 }
  0x58   :  { %p2281_p12 = scmp.ne.s32.totalorder %s2784_s8, %s2280_s24  ;;  %p2284_p13 = scmp.lt.u32.totalorder %s2280_s24, %s2784_s8 }
  0x5a   :  { %p2286_p0 = pnand %p2284_p13, %p2281_p12 }
  0x5c   :  { %2289 = shalt.err (!%p2286_p0)
}
  0x5d   :  { %s2290_s12 = scalar_lea.vmem %s2509_s15, 512  ;;  %p2295_p2 = scmp.lt.s32.totalorder %s2509_s15, %s2509_s15 }
  0x5e   :  { %p2291_p1 = scmp.ne.s32.totalorder %s2509_s15, %s2290_s12  ;;  %p2296_p3 = scmp.lt.s32.totalorder %s2290_s12, %s2290_s12 }
  0x60   :  { %p2297_p4 = por %p2296_p3, %p2295_p2 }
  0x62   :  { %p2298_p5 = pnand %p2297_p4, %p2291_p1 }
  0x64   :  { %2301 = shalt.err (!%p2298_p5)
}
  0x65   :  { %100 = dma.hbm_to_vmem [thread:$0]  %s2784_s8, 512, %s2509_s15, [#allocation13], %s2360_s29, %s2360_s29, %s2361_s30  }
  0x66   :  { %2346 = dma.done.wait [#allocation4], 256  }
  0x67   :  { %2347 = vsyncadd [#allocation4], 4294967040 }
  0x68   :  { %2348 = dma.done.wait [#allocation7], 768  }
  0x69   :  { %2349 = vsyncadd [#allocation7], 4294966528 }
  0x6a   :  { %2350 = dma.done.wait [#allocation10], 768  }
  0x6b   :  { %2351 = vsyncadd [#allocation10], 4294966528 }
  0x6c   :  { %2352 = dma.done.wait [#allocation13], 512  }
  0x6d   :  { %2353 = vsyncadd [#allocation13], 4294966784  ;;  %v218_v0 = vld [vmem:[#allocation9] sm:$0xff]  ;;  %v219_v1 = vld [vmem:[#allocation9 + $0x8] sm:$0xff]  ;;  %vm228_vm0 = vcmask 195584   ;;  %vm136_vm1 = vcmask 261120  }
  0x6e   :  { %v125_v2 = vld [vmem:[#allocation8] sm:$0xff]  ;;  %v2105_v3 = vpack.c.bf16 %v219_v1, %v218_v0  ;;  %v126_v4 = vld [vmem:[#allocation8 + $0x8] sm:$0xff]  ;;  %v127_v5 = vld [vmem:[#allocation8 + $0x10] sm:$0xff]  ;;  %v2366_v14 = vmov 0.0   ;;  %vm2367_vm2 = vmmov 0   ;;  %vm395_vm3 = vcmask 64512  }
  0x6f   :  { %v2097_v6 = vpack.c.bf16 %v126_v4, %v125_v2  ;;  %v220_v7 = vld [vmem:[#allocation9 + $0x10] sm:$0xff]  ;;  %v128_v8 = vld [vmem:[#allocation8 + $0x18] sm:$0xff]  ;;  %v121_v11 = vld [vmem:[#allocation3] sm:$0xff]  ;;  %s2368_s17 = smov 120   ;;  %s2370_s4 = smov 104   ;;  %vm1062_vm4 = vcmask 130112  }
  0x70   :  { %v123_v9 = vld [vmem:[#allocation6] sm:$0xff]  ;;  %2106 = vmatprep.subr.bf16.mxu1 %v2105_v3  ;;  %v2101_v10 = vpack.c.bf16 %v128_v8, %v127_v5  ;;  %v124_v12 = vld [vmem:[#allocation6 + $0x8] sm:$0xff]  ;;  %1985 = vmatprep.mubr.msk.f32.mxu0 %vm136_vm1, %v121_v11  ;;  %v122_v13 = vld [vmem:[#allocation3 + $0x8] sm:$0xff]  ;;  %s2371_s20 = smov 16   ;;  %vm1405_vm5 = vcmask 195712   ;;  %s2372_s19 = smov 24  }
  0x71   :  { %1994 = vmatprep.mubr.msk.f32.mxu1 %vm228_vm0, %v123_v9  ;;  %2098 = vmatprep.subr.bf16.mxu0 %v2097_v6  ;;  %v1890_v15 = vld [vmem:[%s2781_s5] ss:$0 sm:$0xff]  ;;  %v310_v25 = vld [vmem:[#allocation11] sm:$0xff]  ;;  %v311_v26 = vld [vmem:[#allocation11 + $0x8] sm:$0xff]  ;;  %vm1748_vm6 = vcmask 261312   ;;  %s2373_s21 = smov [#allocation15]  }
  0x72   :  { %2108 = vmatpush3.bf16.msra.mxu1 %v2105_v3  ;;  %2100 = vmatpush3.bf16.msra.mxu0 %v2097_v6  ;;  %v1887_v20 = vld [vmem:[%s2779_s3] ss:$0 sm:$0xff]  ;;  %v2109_v27 = vpack.c.bf16 %v311_v26, %v310_v25  ;;  %v312_v28 = vld [vmem:[#allocation11 + $0x10] sm:$0xff]  ;;  %s1868_s22 = sshll.u32 %s2373_s21, 4  ;;  %s1869_s22 = int_to_ptr.vmem [resolvable:$true] %s1868_s22 }
  0x73   :  { %1992 = vmatprep.subr.mxu1 %v220_v7  ;;  %2102 = vmatprep.subr.bf16.mxu0 %v2101_v10  ;;  %v1893_v46 = vld [vmem:[%s2783_s7] ss:$0 sm:$0xff]  ;;  %s2369_s7 = smov 112   ;;  %s2302_s2 = scalar_lea.vmem %s1869_s22, 256 }
  0x74   :  { %p2303_p6 = scmp.ne.s32.totalorder %s1869_s22, %s2302_s2  ;;  %p2307_p7 = scmp.lt.s32.totalorder %s1869_s22, %s1869_s22 }
  0x75   :  { %p2308_p8 = scmp.lt.s32.totalorder %s2302_s2, %s2302_s2 }
  0x76   :  { %1993 = vmatpush3.msra.mxu1 %v220_v7  ;;  %2104 = vmatpush3.bf16.msra.mxu0 %v2101_v10 }
  0x77   :  { %1995 = vmatmul.mubr.msk.f32.vlgmr.msra.gmra.mrb[0].mxu1 %vm228_vm0, %v124_v12  ;;  %2006 = vmatprep.subr.mxu0 %v2366_v14  ;;  %p2309_p9 = por %p2308_p8, %p2307_p7 }
  0x78   :  { %2003 = vmatprep.mubr.msk.f32.mxu1 %vm228_vm0, %v123_v9  ;;  %2110 = vmatprep.subr.bf16.mxu1 %v2109_v27 }
  0x79   :  { %1986 = vmatmul.mubr.msk.f32.vlgmr.msra.gmra.mrb[0].mxu0 %vm136_vm1, %v122_v13  ;;  %2112 = vmatpush3.bf16.msra.mxu1 %v2109_v27  ;;  %p2310_p10 = pnand %p2309_p9, %p2303_p6 }
  0x7a   :  { %2008 = vmatprep.mubr.msk.f32.mxu0 %vm2367_vm2, %v2366_v14  ;;  %2001 = vmatprep.subr.mxu1 %v312_v28 }
  0x7d   :  { %2002 = vmatpush3.msra.mxu1 %v312_v28 }
  0x7e   :  { %2004 = vmatmul.mubr.msk.f32.vlgmr.msra.gmra.mrb[2].mxu1 %vm228_vm0, %v124_v12  ;;  %2016 = vmatprep.subr.mxu1 %v2366_v14 }
  0x7f   :  { %2018 = vmatprep.mubr.msk.f32.mxu1 %vm2367_vm2, %v2366_v14 }
 0x14a   :  { %v1996_v16 = vpop.f32.mrb[0].mxu1 }
 0x14b   :  { %v2557_v17 = vadd.f32 %v1996_v16, %v1890_v15  ;;  %v301_v18 = vpop.f32.mrb[1].mxu1 }
 0x14c   :  { %v2559_v19 = vadd.f32 %v1890_v15, %v301_v18  ;;  %v1987_v21 = vpop.f32.mrb[0].mxu0 }
 0x14d   :  { %800 = vrot.lane.b32.xlu1 %v2557_v17, %s2368_s17  ;;  %v209_v22 = vpop.f32.mrb[1].mxu0  ;;  %v2579_v24 = vadd.f32 %v1987_v21, %v1887_v20 }
 0x14e   :  { %2007 = vmatpush3.xpose.msk.msra.mxu0 %vm395_vm3, %v2559_v19  ;;  %v2568_v23 = vadd.f32 %v1887_v20, %v209_v22 }
 0x14f   :  { %2011 = vmatprep.subr.mxu0 %v2366_v14 }
 0x151   :  { %720 = vrot.lane.b32.xlu1 %v2568_v23, %s2368_s17  ;;  %2009 = vmatmul.mubr.msk.f32.vlgmr.msra.gmra.mrb[2].mxu0 %vm395_vm3, %v2568_v23  ;;  %v2005_v45 = vpop.f32.mrb[2].mxu1 }
 0x152   :  { %2012 = vmatpush3.xpose.msk.msra.mxu0 %vm395_vm3, %v2557_v17  ;;  %2013 = vmatprep.mubr.msk.f32.mxu0 %vm2367_vm2, %v2366_v14  ;;  %v386_v47 = vpop.f32.mrb[3].mxu1  ;;  %v2599_v48 = vadd.f32 %v2005_v45, %v1893_v46 }
 0x153   :  { %2021 = vmatprep.subr.mxu0 %v2366_v14  ;;  %v2601_v49 = vadd.f32 %v1893_v46, %v386_v47 }
 0x155   :  { %2014 = vmatmul.mubr.msk.f32.vlgmr.msra.gmra.mrb[4].mxu0 %vm395_vm3, %v2579_v24  ;;  %2017 = vmatpush3.msra.mxu1 %v2601_v49 }
 0x156   :  { %2023 = vmatprep.mubr.msk.f32.mxu0 %vm2367_vm2, %v2366_v14  ;;  %2022 = vmatpush3.msra.mxu0 %v2599_v48 }
 0x157   :  { %2026 = vmatprep.subr.mxu1 %v2366_v14  ;;  %2031 = vmatprep.subr.mxu0 %v2366_v14 }
 0x1bf   :  { %v801_v50 = vpop.permute.xlu1 %800 }
 0x1c3   :  { %v721_v51 = vpop.permute.xlu1 %720 }
 0x224   :  { %v468_v29 = vpop.f32.mrb[2].mxu0 }
 0x225   :  { %v2010_v30 = vpop.f32.mrb[3].mxu0  ;;  %v548_v31 = vsel %vm395_vm3, %v468_v29, -inf }
 0x226   :  { %549 = vmax.xlane.f32.xlu0 %v548_v31 }
 0x228   :  { %v544_v32 = vpop.f32.mrb[4].mxu0 }
 0x229   :  { %v2015_v33 = vpop.f32.mrb[5].mxu0  ;;  %v551_v34 = vsel %vm395_vm3, %v544_v32, -inf }
 0x22a   :  { %552 = vmax.xlane.f32.xlu0 %v551_v34 }
 0x240   :  { %722 = vrot.lane.b32.xlu0 %v2559_v19, %s2368_s17 }
 0x2b3   :  { %v550_v35 = vpop.xlane.xlu0 %549 }
 0x2b4   :  { %v554_v36 = vsub.f32 %v468_v29, %v550_v35 }
 0x2b6   :  { %v556_v37 = vmul.f32 1.442695, %v554_v36 }
 0x2b7   :  { %v553_v38 = vpop.xlane.xlu0 %552 }
 0x2b8   :  { %2138 = vpow2.f32 %v556_v37  ;;  %v555_v39 = vsub.f32 %v544_v32, %v553_v38 }
 0x2ba   :  { %v558_v40 = vmul.f32 1.442695, %v555_v39 }
 0x2bb   :  { %v723_v56 = vpop.permute.xlu0 %722 }
 0x2bc   :  { %2140 = vpow2.f32 %v558_v40 }
 0x2c2   :  { %v2139_v41 = vpop.eup %2138 }
 0x2c3   :  { %v560_v42 = vsel %vm395_vm3, %v2139_v41, 0.0 }
 0x2c4   :  { %561 = vadd.xlane.f32.xlu1 %v560_v42 }
 0x2c6   :  { %v2141_v43 = vpop.eup %2140 }
 0x2c7   :  { %v563_v44 = vsel %vm395_vm3, %v2141_v43, 0.0 }
 0x2c8   :  { %564 = vadd.xlane.f32.xlu1 %v563_v44 }
 0x2d9   :  { %798 = vrot.lane.b32.xlu1 %v2579_v24, %s2368_s17 }
 0x351   :  { %v562_v52 = vpop.xlane.xlu1 %561 }
 0x352   :  { %2142 = vrcp.f32 %v562_v52 }
 0x355   :  { %v565_v53 = vpop.xlane.xlu1 %564 }
 0x356   :  { %2144 = vrcp.f32 %v565_v53 }
 0x359   :  { %v799_v59 = vpop.permute.xlu1 %798 }
 0x35c   :  { %v2143_v54 = vpop.eup %2142 }
 0x35d   :  { %v2609_v55 = vmul.f32 %v2143_v54, %v2139_v41 }
 0x35f   :  { %2019 = vmatmul.mubr.msk.f32.vlgmr.msra.gmra.mrb[4].mxu1 %vm395_vm3, %v2609_v55 }
 0x360   :  { %v2145_v57 = vpop.eup %2144  ;;  %2027 = vmatpush3.xpose.msk.msra.mxu1 %vm395_vm3, %v723_v56  ;;  %2028 = vmatprep.mubr.msk.f32.mxu1 %vm2367_vm2, %v2366_v14 }
 0x361   :  { %v2616_v58 = vmul.f32 %v2145_v57, %v2141_v43  ;;  %2036 = vmatprep.subr.mxu1 %v2366_v14 }
 0x363   :  { %2024 = vmatmul.mubr.msk.f32.vlgmr.msra.gmra.mrb[6].mxu0 %vm395_vm3, %v2616_v58  ;;  %2029 = vmatmul.mubr.msk.f32.vlgmr.msra.gmra.mrb[6].mxu1 %vm395_vm3, %v721_v51 }
 0x364   :  { %2032 = vmatpush3.xpose.msk.msra.mxu0 %vm395_vm3, %v801_v50  ;;  %2033 = vmatprep.mubr.msk.f32.mxu0 %vm2367_vm2, %v2366_v14 }
 0x365   :  { %2041 = vmatprep.subr.mxu0 %v2366_v14  ;;  %2038 = vmatprep.mubr.msk.f32.mxu1 %vm2367_vm2, %v2366_v14 }
 0x367   :  { %2034 = vmatmul.mubr.msk.f32.vlgmr.msra.gmra.mrb[8].mxu0 %vm395_vm3, %v799_v59 }
 0x368   :  { %2043 = vmatprep.mubr.msk.f32.mxu0 %vm2367_vm2, %v2366_v14 }
 0x432   :  { %v641_v60 = vpop.f32.mrb[4].mxu1 }
 0x433   :  { %718 = vst.msk [vmem:[#allocation2] sm:$0xff] %vm395_vm3, %v641_v60  ;;  %v2020_v61 = vpop.f32.mrb[5].mxu1 }
 0x436   :  { %v714_v62 = vpop.f32.mrb[6].mxu0  ;;  %v794_v63 = vpop.f32.mrb[6].mxu1 }
 0x437   :  { %719 = vst.msk [vmem:[#allocation2 + $0x8] sm:$0xff] %vm395_vm3, %v714_v62  ;;  %v2025_v0 = vpop.f32.mrb[7].mxu0  ;;  %v2030_v1 = vpop.f32.mrb[7].mxu1  ;;  %v876_v2 = vsel %vm395_vm3, %v794_v63, -inf }
 0x438   :  { %877 = vmax.xlane.f32.xlu0 %v876_v2 }
 0x43a   :  { %v872_v3 = vpop.f32.mrb[8].mxu0 }
 0x43b   :  { %v2035_v4 = vpop.f32.mrb[9].mxu0  ;;  %v879_v5 = vsel %vm395_vm3, %v872_v3, -inf }
 0x43c   :  { %880 = vmax.xlane.f32.xlu1 %v879_v5 }
 0x44d   :  { %978 = vrot.lane.b32.xlu1 %v2599_v48, %s2368_s17 }
 0x44e   :  { %901 = vrot.lane.b32.xlu0 %v2601_v49, %s2368_s17 }
 0x451   :  { %1067 = vrot.lane.b32.xlu1 %v2559_v19, %s2369_s7 }
 0x455   :  { %1145 = vrot.lane.b32.xlu1 %v2557_v17, %s2369_s7 }
 0x459   :  { %1143 = vrot.lane.b32.xlu1 %v2579_v24, %s2369_s7 }
 0x4c5   :  { %v878_v6 = vpop.xlane.xlu0 %877 }
 0x4c6   :  { %v882_v7 = vsub.f32 %v794_v63, %v878_v6 }
 0x4c8   :  { %v884_v8 = vmul.f32 1.442695, %v882_v7 }
 0x4c9   :  { %v902_v9 = vpop.permute.xlu0 %901  ;;  %v881_v10 = vpop.xlane.xlu1 %880 }
 0x4ca   :  { %2146 = vpow2.f32 %v884_v8  ;;  %v883_v11 = vsub.f32 %v872_v3, %v881_v10  ;;  %2037 = vmatpush3.msra.mxu1 %v902_v9 }
 0x4cb   :  { %2046 = vmatprep.subr.mxu1 %v2366_v14 }
 0x4cc   :  { %v886_v12 = vmul.f32 1.442695, %v883_v11 }
 0x4cd   :  { %v979_v13 = vpop.permute.xlu1 %978 }
 0x4ce   :  { %2148 = vpow2.f32 %v886_v12  ;;  %2042 = vmatpush3.msra.mxu0 %v979_v13 }
 0x4cf   :  { %2051 = vmatprep.subr.mxu0 %v2366_v14 }
 0x4d1   :  { %v1068_v25 = vpop.permute.xlu1 %1067 }
 0x4d4   :  { %v2147_v15 = vpop.eup %2146 }
 0x4d5   :  { %v888_v16 = vsel %vm395_vm3, %v2147_v15, 0.0  ;;  %v1146_v29 = vpop.permute.xlu1 %1145 }
 0x4d6   :  { %889 = vadd.xlane.f32.xlu0 %v888_v16 }
 0x4d8   :  { %v2149_v18 = vpop.eup %2148 }
 0x4d9   :  { %v891_v20 = vsel %vm395_vm3, %v2149_v18, 0.0  ;;  %v1144_v32 = vpop.permute.xlu1 %1143 }
 0x4da   :  { %892 = vadd.xlane.f32.xlu0 %v891_v20 }
 0x4f0   :  { %1065 = vrot.lane.b32.xlu0 %v2568_v23, %s2369_s7 }
 0x563   :  { %v890_v21 = vpop.xlane.xlu0 %889 }
 0x564   :  { %2150 = vrcp.f32 %v890_v21 }
 0x567   :  { %v893_v22 = vpop.xlane.xlu0 %892 }
 0x568   :  { %2152 = vrcp.f32 %v893_v22 }
 0x56b   :  { %v1066_v31 = vpop.permute.xlu0 %1065 }
 0x56e   :  { %v2151_v26 = vpop.eup %2150 }
 0x56f   :  { %v2651_v27 = vmul.f32 %v2151_v26, %v2147_v15 }
 0x571   :  { %2039 = vmatmul.mubr.msk.f32.vlgmr.msra.gmra.mrb[8].mxu1 %vm395_vm3, %v2651_v27  ;;  %v898_v61 = vadd.f32 %v2651_v27, %v2609_v55 }
 0x572   :  { %v2153_v28 = vpop.eup %2152  ;;  %2047 = vmatpush3.xpose.msk.msra.mxu1 %vm395_vm3, %v1068_v25  ;;  %2048 = vmatprep.mubr.msk.f32.mxu1 %vm2367_vm2, %v2366_v14 }
 0x573   :  { %v2658_v30 = vmul.f32 %v2153_v28, %v2149_v18  ;;  %2056 = vmatprep.subr.mxu1 %v2366_v14 }
 0x575   :  { %2044 = vmatmul.mubr.msk.f32.vlgmr.msra.gmra.mrb[10].mxu0 %vm395_vm3, %v2658_v30  ;;  %2049 = vmatmul.mubr.msk.f32.vlgmr.msra.gmra.mrb[10].mxu1 %vm395_vm3, %v1066_v31  ;;  %v899_v1 = vadd.f32 %v2658_v30, %v2616_v58 }
 0x576   :  { %2052 = vmatpush3.xpose.msk.msra.mxu0 %vm395_vm3, %v1146_v29  ;;  %2053 = vmatprep.mubr.msk.f32.mxu0 %vm2367_vm2, %v2366_v14 }
 0x577   :  { %2061 = vmatprep.subr.mxu0 %v2366_v14  ;;  %2058 = vmatprep.mubr.msk.f32.mxu1 %vm2367_vm2, %v2366_v14 }
 0x579   :  { %2054 = vmatmul.mubr.msk.f32.vlgmr.msra.gmra.mrb[12].mxu0 %vm395_vm3, %v1144_v32 }
 0x57a   :  { %2063 = vmatprep.mubr.msk.f32.mxu0 %vm2367_vm2, %v2366_v14 }
 0x644   :  { %v2673_v33 = vpop.f32.mrb[8].mxu1 }
 0x645   :  { %v2040_v34 = vpop.f32.mrb[9].mxu1 }
 0x648   :  { %v2675_v35 = vpop.f32.mrb[10].mxu0  ;;  %v1139_v36 = vpop.f32.mrb[10].mxu1 }
 0x649   :  { %v2045_v37 = vpop.f32.mrb[11].mxu0  ;;  %v2050_v38 = vpop.f32.mrb[11].mxu1  ;;  %v1221_v39 = vsel %vm395_vm3, %v1139_v36, -inf }
 0x64a   :  { %1222 = vmax.xlane.f32.xlu0 %v1221_v39 }
 0x64c   :  { %v1217_v40 = vpop.f32.mrb[12].mxu0 }
 0x64d   :  { %v2055_v41 = vpop.f32.mrb[13].mxu0  ;;  %v1224_v42 = vsel %vm395_vm3, %v1217_v40, -inf }
 0x64e   :  { %1225 = vmax.xlane.f32.xlu1 %v1224_v42  ;;  %v1753_v41 = vld [vmem:[#allocation12] sm:$0xff]  ;;  %v1754_v42 = vld [vmem:[#allocation12 + $0x8] sm:$0xff] }
 0x65f   :  { %1321 = vrot.lane.b32.xlu1 %v2599_v48, %s2369_s7 }
 0x660   :  { %1245 = vrot.lane.b32.xlu0 %v2601_v49, %s2369_s7 }
 0x663   :  { %1410 = vrot.lane.b32.xlu1 %v2559_v19, %s2370_s4 }
 0x667   :  { %1488 = vrot.lane.b32.xlu1 %v2557_v17, %s2370_s4 }
 0x66b   :  { %1486 = vrot.lane.b32.xlu1 %v2579_v24, %s2370_s4 }
 0x6d7   :  { %v1223_v43 = vpop.xlane.xlu0 %1222 }
 0x6d8   :  { %v1227_v44 = vsub.f32 %v1139_v36, %v1223_v43  ;;  %v2113_v43 = vpack.c.bf16 %v1754_v42, %v1753_v41 }
 0x6da   :  { %v1229_v45 = vmul.f32 1.442695, %v1227_v44  ;;  %v1755_v44 = vld [vmem:[#allocation12 + $0x10] sm:$0xff] }
 0x6db   :  { %v1246_v46 = vpop.permute.xlu0 %1245  ;;  %v1226_v47 = vpop.xlane.xlu1 %1225 }
 0x6dc   :  { %2154 = vpow2.f32 %v1229_v45  ;;  %v1228_v50 = vsub.f32 %v1217_v40, %v1226_v47  ;;  %2057 = vmatpush3.msra.mxu1 %v1246_v46  ;;  %v1756_v45 = vld [vmem:[#allocation12 + $0x18] sm:$0xff] }
 0x6dd   :  { %2066 = vmatprep.subr.mxu1 %v2366_v14  ;;  %v2117_v46 = vpack.c.bf16 %v1756_v45, %v1755_v44 }
 0x6de   :  { %v1231_v51 = vmul.f32 1.442695, %v1228_v50 }
 0x6df   :  { %v1322_v52 = vpop.permute.xlu1 %1321 }
 0x6e0   :  { %2156 = vpow2.f32 %v1231_v51  ;;  %2062 = vmatpush3.msra.mxu0 %v1322_v52 }
 0x6e1   :  { %2071 = vmatprep.subr.mxu0 %v2366_v14 }
 0x6e3   :  { %v1411_v57 = vpop.permute.xlu1 %1410 }
 0x6e6   :  { %v2155_v17 = vpop.eup %2154 }
 0x6e7   :  { %v1233_v19 = vsel %vm395_vm3, %v2155_v17, 0.0  ;;  %v1489_v0 = vpop.permute.xlu1 %1488 }
 0x6e8   :  { %1234 = vadd.xlane.f32.xlu0 %v1233_v19 }
 0x6ea   :  { %v2157_v24 = vpop.eup %2156 }
 0x6eb   :  { %v1236_v53 = vsel %vm395_vm3, %v2157_v24, 0.0  ;;  %v1487_v3 = vpop.permute.xlu1 %1486 }
 0x6ec   :  { %1237 = vadd.xlane.f32.xlu0 %v1236_v53 }
 0x702   :  { %1408 = vrot.lane.b32.xlu0 %v2568_v23, %s2370_s4 }
 0x775   :  { %v1235_v54 = vpop.xlane.xlu0 %1234 }
 0x776   :  { %2158 = vrcp.f32 %v1235_v54 }
 0x779   :  { %v1238_v56 = vpop.xlane.xlu0 %1237 }
 0x77a   :  { %2160 = vrcp.f32 %v1238_v56 }
 0x77d   :  { %v1409_v2 = vpop.permute.xlu0 %1408 }
 0x780   :  { %v2159_v59 = vpop.eup %2158 }
 0x781   :  { %v1241_v60 = vmul.f32 %v2159_v59, %v2155_v17 }
 0x783   :  { %2059 = vmatmul.mubr.msk.f32.vlgmr.msra.gmra.mrb[12].mxu1 %vm395_vm3, %v1241_v60  ;;  %v2698_v62 = vadd.f32 %v1241_v60, %v898_v61 }
 0x784   :  { %v2161_v63 = vpop.eup %2160  ;;  %2067 = vmatpush3.xpose.msk.msra.mxu1 %vm395_vm3, %v1411_v57  ;;  %2068 = vmatprep.mubr.msk.f32.mxu1 %vm2367_vm2, %v2366_v14 }
 0x785   :  { %v1242_v23 = vmul.f32 %v2161_v63, %v2157_v24  ;;  %2076 = vmatprep.subr.mxu1 %v2366_v14 }
 0x787   :  { %2064 = vmatmul.mubr.msk.f32.vlgmr.msra.gmra.mrb[14].mxu0 %vm395_vm3, %v1242_v23  ;;  %2069 = vmatmul.mubr.msk.f32.vlgmr.msra.gmra.mrb[14].mxu1 %vm395_vm3, %v1409_v2  ;;  %v2708_v55 = vadd.f32 %v1242_v23, %v899_v1 }
 0x788   :  { %2072 = vmatpush3.xpose.msk.msra.mxu0 %vm395_vm3, %v1489_v0  ;;  %2073 = vmatprep.mubr.msk.f32.mxu0 %vm2367_vm2, %v2366_v14 }
 0x789   :  { %2081 = vmatprep.subr.mxu0 %v2366_v14  ;;  %2078 = vmatprep.mubr.msk.f32.mxu1 %vm2367_vm2, %v2366_v14 }
 0x78b   :  { %2074 = vmatmul.mubr.msk.f32.vlgmr.msra.gmra.mrb[16].mxu0 %vm395_vm3, %v1487_v3 }
 0x78c   :  { %2083 = vmatprep.mubr.msk.f32.mxu0 %vm2367_vm2, %v2366_v14 }
 0x856   :  { %v1317_v58 = vpop.f32.mrb[12].mxu1 }
 0x857   :  { %v2060_v4 = vpop.f32.mrb[13].mxu1 }
 0x85a   :  { %v1393_v5 = vpop.f32.mrb[14].mxu0  ;;  %v1482_v6 = vpop.f32.mrb[14].mxu1 }
 0x85b   :  { %v2065_v7 = vpop.f32.mrb[15].mxu0  ;;  %v2070_v8 = vpop.f32.mrb[15].mxu1  ;;  %v1564_v9 = vsel %vm395_vm3, %v1482_v6, -inf }
 0x85c   :  { %1565 = vmax.xlane.f32.xlu0 %v1564_v9 }
 0x85e   :  { %v1560_v10 = vpop.f32.mrb[16].mxu0 }
 0x85f   :  { %v2075_v11 = vpop.f32.mrb[17].mxu0  ;;  %v1567_v12 = vsel %vm395_vm3, %v1560_v10, -inf }
 0x860   :  { %1568 = vmax.xlane.f32.xlu1 %v1567_v12 }
 0x871   :  { %1664 = vrot.lane.b32.xlu1 %v2599_v48, %s2370_s4 }
 0x875   :  { %1056 = vrot.lane.b32.xlu1 %v2673_v33, %s2361_s30 }
 0x879   :  { %1058 = vrot.lane.b32.xlu1 %v2675_v35, %s2361_s30 }
 0x87d   :  { %1401 = vrot.lane.b32.xlu1 %v1393_v5, %s2371_s20 }
 0x8e9   :  { %v1566_v14 = vpop.xlane.xlu0 %1565 }
 0x8ea   :  { %v1570_v13 = vsub.f32 %v1482_v6, %v1566_v14 }
 0x8ec   :  { %v1572_v15 = vmul.f32 1.442695, %v1570_v13 }
 0x8ed   :  { %v1569_v16 = vpop.xlane.xlu1 %1568 }
 0x8ee   :  { %2162 = vpow2.f32 %v1572_v15  ;;  %v1571_v18 = vsub.f32 %v1560_v10, %v1569_v16 }
 0x8f0   :  { %v1574_v20 = vmul.f32 1.442695, %v1571_v18 }
 0x8f1   :  { %v1665_v21 = vpop.permute.xlu1 %1664 }
 0x8f2   :  { %2164 = vpow2.f32 %v1574_v20  ;;  %2082 = vmatpush3.msra.mxu0 %v1665_v21 }
 0x8f5   :  { %v1057_v48 = vpop.permute.xlu1 %1056 }
 0x8f6   :  { %1063 = vst.msk [vmem:[#allocation2] sm:$0xff] %vm1062_vm4, %v1057_v48 }
 0x8f8   :  { %v2163_v22 = vpop.eup %2162 }
 0x8f9   :  { %v1059_v25 = vpop.permute.xlu1 %1058  ;;  %v1576_v26 = vsel %vm395_vm3, %v2163_v22, 0.0 }
 0x8fa   :  { %1064 = vst.msk [vmem:[#allocation2 + $0x8] sm:$0xff] %vm1062_vm4, %v1059_v25  ;;  %1577 = vadd.xlane.f32.xlu0 %v1576_v26 }
 0x8fc   :  { %v2165_v27 = vpop.eup %2164 }
 0x8fd   :  { %v1402_v28 = vpop.permute.xlu1 %1401  ;;  %v1579_v29 = vsel %vm395_vm3, %v2165_v27, 0.0 }
 0x8fe   :  { %1407 = vst.msk [vmem:[#allocation2 + $0x8] sm:$0xff] %vm1405_vm5, %v1402_v28  ;;  %1580 = vadd.xlane.f32.xlu0 %v1579_v29 }
 0x914   :  { %1588 = vrot.lane.b32.xlu0 %v2601_v49, %s2370_s4 }
 0x918   :  { %1399 = vrot.lane.b32.xlu0 %v1317_v58, %s2371_s20 }
 0x987   :  { %v1578_v30 = vpop.xlane.xlu0 %1577 }
 0x988   :  { %2166 = vrcp.f32 %v1578_v30 }
 0x98b   :  { %v1581_v31 = vpop.xlane.xlu0 %1580 }
 0x98c   :  { %2168 = vrcp.f32 %v1581_v31 }
 0x98f   :  { %v1589_v32 = vpop.permute.xlu0 %1588 }
 0x990   :  { %2077 = vmatpush3.msra.mxu1 %v1589_v32 }
 0x991   :  { %2114 = vmatprep.subr.bf16.mxu1 %v2113_v43 }
 0x992   :  { %v2167_v33 = vpop.eup %2166 }
 0x993   :  { %v1584_v34 = vmul.f32 %v2167_v33, %v2163_v22  ;;  %v1400_v35 = vpop.permute.xlu0 %1399 }
 0x994   :  { %1406 = vst.msk [vmem:[#allocation2] sm:$0xff] %vm1405_vm5, %v1400_v35 }
 0x995   :  { %2079 = vmatmul.mubr.msk.f32.vlgmr.msra.gmra.mrb[16].mxu1 %vm395_vm3, %v1584_v34  ;;  %v1586_v36 = vadd.f32 %v1584_v34, %v2698_v62 }
 0x996   :  { %v2169_v37 = vpop.eup %2168  ;;  %2116 = vmatpush3.bf16.msra.mxu1 %v2113_v43 }
 0x997   :  { %v1585_v38 = vmul.f32 %v2169_v37, %v2165_v27  ;;  %v1847_v39 = vmul.f32 0.25, %v1586_v36  ;;  %2118 = vmatprep.subr.bf16.mxu1 %v2117_v46 }
 0x999   :  { %2084 = vmatmul.mubr.msk.f32.vlgmr.msra.gmra.mrb[18].mxu0 %vm395_vm3, %v1585_v38  ;;  %v1587_v49 = vadd.f32 %v1585_v38, %v2708_v55  ;;  %1849 = vst.msk [vmem:[#allocation15] sm:$0xff] %vm395_vm3, %v1847_v39 }
 0x99a   :  { %2120 = vmatpush3.bf16.msra.mxu1 %v2117_v46 }
 0x99b   :  { %v1848_v40 = vmul.f32 0.25, %v1587_v49 }
 0x99d   :  { %1850 = vst.msk [vmem:[#allocation15 + $0x8] sm:$0xff] %vm395_vm3, %v1848_v40 }
 0xa68   :  { %v1660_v47 = vpop.f32.mrb[16].mxu1 }
 0xa69   :  { %1742 = vrot.lane.b32.xlu0 %v1660_v47, %s2372_s19  ;;  %v2080_v50 = vpop.f32.mrb[17].mxu1 }
 0xa6c   :  { %v1736_v51 = vpop.f32.mrb[18].mxu0 }
 0xa6d   :  { %1744 = vrot.lane.b32.xlu1 %v1736_v51, %s2372_s19  ;;  %v2085_v52 = vpop.f32.mrb[19].mxu0 }
 0xadb   :  { %v1743_v17 = vpop.permute.xlu0 %1742 }
 0xadc   :  { %1749 = vst.msk [vmem:[#allocation2] sm:$0xff] %vm1748_vm6, %v1743_v17 }
 0xadf   :  { %v1745_v19 = vpop.permute.xlu1 %1744 }
 0xae0   :  { %1750 = vst.msk [vmem:[#allocation2 + $0x8] sm:$0xff] %vm1748_vm6, %v1745_v19 }
 0xae3   :  { %v1751_v24 = vld [vmem:[#allocation2] sm:$0xff] }
 0xae4   :  { %2094 = vmatprep.mubr.msk.f32.mxu1 %vm136_vm1, %v1751_v24 }
 0xae7   :  { %v1752_v53 = vld [vmem:[#allocation2 + $0x8] sm:$0xff] }
 0xae8   :  { %2095 = vmatmul.mubr.msk.f32.vlgmr.msra.gmra.mrb[18].mxu1 %vm136_vm1, %v1752_v53 }
 0xae9   :  { %2313 = shalt.err (!%p2310_p10)
}
 0xaea   :  { %s2314_s1 = scalar_lea.hbm %s2787_s11, 256 }
 0xaeb   :  { %p2315_p11 = scmp.ne.s32.totalorder %s2787_s11, %s2314_s1  ;;  %p2318_p12 = scmp.lt.u32.totalorder %s2314_s1, %s2787_s11 }
 0xaed   :  { %p2320_p13 = pnand %p2318_p12, %p2315_p11 }
 0xaef   :  { %2323 = shalt.err (!%p2320_p13)
}
 0xaf0   :  { %1874 = dma.vmem_to_hbm [thread:$0]  %s1869_s22, 256, %s2787_s11, [#allocation16], %s2360_s29, %s2360_s29, %s2361_s30  }
 0xaf1   :  { %v1920_v54 = vld [vmem:[%s2785_s9] ss:$0 sm:$0xff]  ;;  %s2374_s13 = smov [#allocation14]  }
 0xaf2   :  { %s1856_s8 = sshll.u32 %s2374_s13, 4  ;;  %s1857_s8 = int_to_ptr.vmem [resolvable:$true] %s1856_s8 }
 0xaf3   :  { %s2324_s14 = scalar_lea.vmem %s1857_s8, 256  ;;  %p2329_p1 = scmp.lt.s32.totalorder %s1857_s8, %s1857_s8 }
 0xaf4   :  { %p2325_p0 = scmp.ne.s32.totalorder %s1857_s8, %s2324_s14  ;;  %p2330_p2 = scmp.lt.s32.totalorder %s2324_s14, %s2324_s14 }
 0xaf6   :  { %p2331_p3 = por %p2330_p2, %p2329_p1 }
 0xaf8   :  { %p2332_p4 = pnand %p2331_p3, %p2325_p0 }
 0xbbb   :  { %v2096_v56 = vpop.f32.mrb[18].mxu1 }
 0xbbc   :  { %v1842_v57 = vadd.f32 %v2096_v56, %v1920_v54  ;;  %v1836_v59 = vpop.f32.mrb[19].mxu1 }
 0xbbd   :  { %v1837_v60 = vadd.f32 %v1920_v54, %v1836_v59 }
 0xbbe   :  { %1846 = vst.msk [vmem:[#allocation14 + $0x8] sm:$0xff] %vm136_vm1, %v1842_v57 }
 0xbbf   :  { %1845 = vst.msk [vmem:[#allocation14] sm:$0xff] %vm136_vm1, %v1837_v60 }
 0xbc0   :  { %2335 = shalt.err (!%p2332_p4)
}
 0xbc1   :  { %s2336_s15 = scalar_lea.hbm %s2786_s10, 256 }
 0xbc2   :  { %p2337_p5 = scmp.ne.s32.totalorder %s2786_s10, %s2336_s15  ;;  %p2340_p6 = scmp.lt.u32.totalorder %s2336_s15, %s2786_s10 }
 0xbc4   :  { %p2342_p7 = pnand %p2340_p6, %p2337_p5 }
 0xbc6   :  { %2345 = shalt.err (!%p2342_p7)
}
 0xbc7   :  { %1862 = dma.vmem_to_hbm [thread:$0]  %s1857_s8, 256, %s2786_s10, [#allocation5], %s2360_s29, %s2360_s29, %s2361_s30  }
 0xbc8   :  { %2354 = dma.done.wait [#allocation5], 256  }
 0xbc9   :  { %2355 = vsyncadd [#allocation5], 4294967040 }
 0xbca   :  { %2356 = dma.done.wait [#allocation16], 256  }
 0xbcb   :  { %2357 = vsyncadd [#allocation16], 4294967040 }
 0xbcc   :  { %1881 = vsyncpa [#allocation4], 1 }
 0xbcd   :  { %1882 = vsyncpa [#allocation7], 1 }
 0xbce   :  { %1883 = vsyncpa [#allocation10], 1 }
 0xbcf   :  { %1884 = vsyncpa [#allocation13], 1 }
 0xbd0   :  { %1885 = vsyncpa [#allocation5], 1 }
 0xbd1   :  { %1886 = vsyncpa [#allocation16], 1 }

</bundles_post_ra>
